<compile_context>
chip_gen: v7x
topology: tpu7x:2x2x1
jax: 0.10.0
libtpu: 0.0.40
codegen_flags: <defaults>
</compile_context>

<pallas_src>
import functools

import jax
import jax.numpy as jnp
from jax.experimental import pallas as pl
from jax.experimental.pallas import tpu as pltpu


def _round_up(x, m):
    return ((x + m - 1) // m) * m


def _focal_kernel(x_ref, t_ref, out_ref, acc_ref, *, gamma, tm, m_total):
    """One grid step: a (C, TM) tile of logits + a (1, TM) tile of targets.

    Per-column focal losses are accumulated elementwise into the (1, TM)
    VMEM scratch; the single reduce + store to this core's (8, 128) output
    tile happens only on the last inner step.
    """
    core = pl.program_id(0)          # parallel (megacore) axis
    i = pl.program_id(1)             # sequential block axis
    n_inner = pl.num_programs(1)

    @pl.when(i == 0)
    def _init():
        acc_ref[...] = jnp.zeros_like(acc_ref)

    x = x_ref[...].astype(jnp.float32)        # (C, TM) logits, f32 compute
    t = t_ref[...]                            # (1, TM) int32 class ids

    # one-hot compare for the scatter_/gather of the target logit
    cls_ids = jax.lax.broadcasted_iota(jnp.int32, x.shape, 0)   # (C, TM)
    onehot = (cls_ids == t).astype(jnp.float32)                 # (C, TM)

    # log-sum-exp softmax of the target class (reduce over sublane axis C)
    m = jnp.max(x, axis=0, keepdims=True)                       # (1, TM)
    sum_e = jnp.sum(jnp.exp(x - m), axis=0, keepdims=True)      # (1, TM)
    x_t = jnp.sum(x * onehot, axis=0, keepdims=True)            # (1, TM)
    log_p = (x_t - m) - jnp.log(sum_e)                          # (1, TM)
    p = jnp.exp(log_p)                                          # (1, TM)

    one_minus_p = 1.0 - p
    g = float(gamma)
    if g == int(g) and 0 <= int(g) <= 8:
        w = jnp.ones_like(one_minus_p)
        for _ in range(int(g)):                 # gamma=2 -> pure VPU multiplies
            w = w * one_minus_p
    else:
        w = jnp.power(one_minus_p, g)

    loss = -w * log_p                                           # (1, TM)

    # mask out tail columns / duplicated (clamped) blocks by *logical* column
    col = (core * n_inner + i) * tm + jax.lax.broadcasted_iota(
        jnp.int32, (1, tm), 1)
    loss = jnp.where(col < m_total, loss, 0.0)

    acc_ref[...] = acc_ref[...] + loss

    @pl.when(i == n_inner - 1)
    def _fin():
        s = jnp.sum(acc_ref[...])               # single cross-lane reduce
        ri = jax.lax.broadcasted_iota(jnp.int32, (8, 128), 0)
        ci = jax.lax.broadcasted_iota(jnp.int32, (8, 128), 1)
        out_ref[...] = jnp.where((ri == 0) & (ci == 0), s, jnp.float32(0.0))


def focal_loss(inputs, targets, *, class_num, gamma=2.0, size_average=True,
               tm=65536, num_cores=2):
    """Pallas implementation of FocalLoss.forward (softmax path, reduce=True)."""
    N, C, H, W = inputs.shape
    assert C == class_num
    M = N * H * W

    # Lane-dense relayout: classes on sublanes, pixels on lanes.
    # NCHW -> (C, N*H*W) is a cheap leading-axis transpose.
    x = jnp.transpose(inputs, (1, 0, 2, 3)).reshape(C, M)
    t = targets.reshape(1, M).astype(jnp.int32)

    # Lane tile: multiple of 128, clamped so tiny problems use one small block.
    tm = max(128, min(int(tm), _round_up(M, 128)))
    nblocks = pl.cdiv(M, tm)
    ncores = min(int(num_cores), nblocks)       # 2 TCs on v7x, no-op elsewhere
    bpc = pl.cdiv(nblocks, ncores)              # blocks per core

    def xt_index(c, i):
        # Clamp so the DMA never starts out of range; the kernel masks the
        # (duplicated / tail) columns by their logical global index.
        return (0, jnp.minimum(c * bpc + i, nblocks - 1))

    kernel = functools.partial(_focal_kernel, gamma=float(gamma), tm=tm,
                               m_total=M)
    partials = pl.pallas_call(
        kernel,
        out_shape=jax.ShapeDtypeStruct((ncores * 8, 128), jnp.float32),
        grid_spec=pltpu.PrefetchScalarGridSpec(
            num_scalar_prefetch=0,
            grid=(ncores, bpc),
            in_specs=[
                pl.BlockSpec((C, tm), xt_index),   # logits  (C, TM)
                pl.BlockSpec((1, tm), xt_index),   # targets (1, TM)
            ],
            out_specs=pl.BlockSpec((8, 128), lambda c, i: (c, 0)),
            scratch_shapes=[pltpu.VMEM((1, tm), jnp.float32)],
        ),
        compiler_params=pltpu.CompilerParams(
            dimension_semantics=("parallel", "arbitrary")),
    )(x, t)

    total = jnp.sum(partials)                   # only [8*c, 0] entries nonzero
    if size_average:
        return total / jnp.float32(M)
    return total


def _focal_loss_ref(inputs, targets, gamma=2.0):
    """Pure-JAX reference mirroring the PyTorch softmax branch."""
    N, C, H, W = inputs.shape
    p = jax.nn.softmax(inputs.astype(jnp.float32), axis=1)
    mask = jax.nn.one_hot(targets, C, axis=1, dtype=jnp.float32)  # (N,C,H,W)
    probs = jnp.sum(p * mask, axis=1, keepdims=True)              # (N,1,H,W)
    batch_loss = -jnp.power(1.0 - probs, gamma) * jnp.log(probs)
    return jnp.mean(batch_loss)


if __name__ == "__main__":
    key = jax.random.PRNGKey(0)
    k1, k2 = jax.random.split(key)

    N, C, H, W = 2, 4, 16, 16
    inputs = jax.random.normal(k1, (N, C, H, W), dtype=jnp.float32)
    targets = jax.random.randint(k2, (N, H, W), 0, C, dtype=jnp.int32)

    # deterministic "parameter" from __init__ (unused in the softmax forward)
    alpha = jnp.ones((C, 1), jnp.float32)

    out = focal_loss(inputs, targets, class_num=C, gamma=2.0,
                     size_average=True)
    out = jax.block_until_ready(out)

    ref = _focal_loss_ref(inputs, targets, gamma=2.0)
    assert jnp.allclose(out, ref, rtol=1e-5, atol=1e-6), (out, ref)

    print("KERNEL_OK")
</pallas_src>

<mosaic_0001>
module attributes {stable_mosaic.version = 11 : i64} {
  func.func @_focal_kernel(%arg0: i32, %arg1: i32, %arg2: memref<4x512xf32, #tpu.memory_space<vmem>>, %arg3: memref<1x512xi32, #tpu.memory_space<vmem>>, %arg4: memref<8x128xf32, #tpu.memory_space<vmem>>, %arg5: memref<1x512xf32, #tpu.memory_space<vmem>>) attributes {dimension_semantics = [#tpu.dimension_semantics<parallel>, #tpu.dimension_semantics<arbitrary>], iteration_bounds = array<i64: 1, 1>, scalar_prefetch = 0 : i64, scratch_operands = 1 : i64, tpu.core_type = #tpu.core_type<tc>, window_params = [{transform_indices = @transform_0, window_bounds = array<i64: 4, 512>}, {transform_indices = @transform_1, window_bounds = array<i64: 1, 512>}, {transform_indices = @transform_2, window_bounds = array<i64: 8, 128>}]} {
    %c0_i32 = arith.constant 0 : i32
    %0 = arith.cmpi eq, %arg1, %c0_i32 : i32
    %1 = arith.extui %0 : i1 to i32
    %c0_i32_0 = arith.constant 0 : i32
    %2 = arith.cmpi ne, %1, %c0_i32_0 : i32
    scf.if %2 {
      %cst_17 = arith.constant 0.000000e+00 : f32
      %48 = vector.broadcast %cst_17 : f32 to vector<1x512xf32>
      %c0_18 = arith.constant 0 : index
      %c0_19 = arith.constant 0 : index
      %49 = vector.load %arg5[%c0_18, %c0_19] : memref<1x512xf32, #tpu.memory_space<vmem>>, vector<1x512xf32>
      tpu.vector_store %arg5[%c0_18, %c0_19], %48 {strides = array<i32>} : memref<1x512xf32, #tpu.memory_space<vmem>>, vector<1x512xf32>,
    } else {
    }
    %c0 = arith.constant 0 : index
    %c0_1 = arith.constant 0 : index
    %3 = vector.load %arg2[%c0, %c0_1] : memref<4x512xf32, #tpu.memory_space<vmem>>, vector<4x512xf32>
    %c0_2 = arith.constant 0 : index
    %c0_3 = arith.constant 0 : index
    %4 = vector.load %arg3[%c0_2, %c0_3] : memref<1x512xi32, #tpu.memory_space<vmem>>, vector<1x512xi32>
    %5 = tpu.iota {dimensions = array<i32: 0>} : vector<4x512xi32>
    %6 = vector.broadcast %4 : vector<1x512xi32> to vector<4x512xi32>
    %7 = arith.cmpi eq, %5, %6 : vector<4x512xi32>
    %8 = arith.extui %7 : vector<4x512xi1> to vector<4x512xi32>
    %9 = arith.sitofp %8 : vector<4x512xi32> to vector<4x512xf32>
    %cst = arith.constant dense<0xFF800000> : vector<512xf32>
    %10 = vector.multi_reduction <maximumf>, %3, %cst [0] : vector<4x512xf32> to vector<512xf32>
    %11 = vector.shape_cast %10 : vector<512xf32> to vector<1x512xf32>
    %12 = vector.broadcast %11 : vector<1x512xf32> to vector<4x512xf32>
    %13 = arith.subf %3, %12 : vector<4x512xf32>
    %14 = math.exp %13 : vector<4x512xf32>
    %cst_4 = arith.constant dense<0.000000e+00> : vector<512xf32>
    %15 = vector.multi_reduction <add>, %14, %cst_4 [0] : vector<4x512xf32> to vector<512xf32>
    %16 = vector.shape_cast %15 : vector<512xf32> to vector<1x512xf32>
    %17 = arith.mulf %3, %9 : vector<4x512xf32>
    %cst_5 = arith.constant dense<0.000000e+00> : vector<512xf32>
    %18 = vector.multi_reduction <add>, %17, %cst_5 [0] : vector<4x512xf32> to vector<512xf32>
    %19 = vector.shape_cast %18 : vector<512xf32> to vector<1x512xf32>
    %20 = arith.subf %19, %11 : vector<1x512xf32>
    %21 = math.log %16 : vector<1x512xf32>
    %22 = arith.subf %20, %21 : vector<1x512xf32>
    %23 = math.exp %22 : vector<1x512xf32>
    %cst_6 = arith.constant 1.000000e+00 : f32
    %24 = vector.broadcast %cst_6 : f32 to vector<1x512xf32>
    %25 = arith.subf %24, %23 : vector<1x512xf32>
    %cst_7 = arith.constant 1.000000e+00 : f32
    %26 = vector.broadcast %cst_7 : f32 to vector<1x512xf32>
    %27 = arith.mulf %26, %25 : vector<1x512xf32>
    %28 = arith.mulf %27, %25 : vector<1x512xf32>
    %cst_8 = arith.constant 0.000000e+00 : f32
    %29 = vector.broadcast %cst_8 : f32 to vector<1x512xf32>
    %30 = arith.subf %29, %28 : vector<1x512xf32>
    %31 = arith.mulf %30, %22 : vector<1x512xf32>
    %c1_i32 = arith.constant 1 : i32
    %32 = arith.muli %arg0, %c1_i32 : i32
    %33 = arith.addi %32, %arg1 : i32
    %c512_i32 = arith.constant 512 : i32
    %34 = arith.muli %33, %c512_i32 : i32
    %35 = tpu.iota {dimensions = array<i32: 1>} : vector<1x512xi32>
    %36 = vector.broadcast %34 : i32 to vector<1x512xi32>
    %37 = arith.addi %36, %35 : vector<1x512xi32>
    %c512_i32_9 = arith.constant 512 : i32
    %38 = vector.broadcast %c512_i32_9 : i32 to vector<1x512xi32>
    %39 = arith.cmpi slt, %37, %38 : vector<1x512xi32>
    %cst_10 = arith.constant 0.000000e+00 : f32
    %40 = vector.broadcast %cst_10 : f32 to vector<1x512xf32>
    %41 = arith.select %39, %31, %40 : vector<1x512xi1>, vector<1x512xf32>
    %c0_11 = arith.constant 0 : index
    %c0_12 = arith.constant 0 : index
    %42 = vector.load %arg5[%c0_11, %c0_12] : memref<1x512xf32, #tpu.memory_space<vmem>>, vector<1x512xf32>
    %43 = arith.addf %42, %41 : vector<1x512xf32>
    %c0_13 = arith.constant 0 : index
    %c0_14 = arith.constant 0 : index
    %44 = vector.load %arg5[%c0_13, %c0_14] : memref<1x512xf32, #tpu.memory_space<vmem>>, vector<1x512xf32>
    tpu.vector_store %arg5[%c0_13, %c0_14], %43 {strides = array<i32>} : memref<1x512xf32, #tpu.memory_space<vmem>>, vector<1x512xf32>,
    %c0_i32_15 = arith.constant 0 : i32
    %45 = arith.cmpi eq, %arg1, %c0_i32_15 : i32
    %46 = arith.extui %45 : i1 to i32
    %c0_i32_16 = arith.constant 0 : i32
    %47 = arith.cmpi ne, %46, %c0_i32_16 : i32
    scf.if %47 {
      %c0_17 = arith.constant 0 : index
      %c0_18 = arith.constant 0 : index
      %48 = vector.load %arg5[%c0_17, %c0_18] : memref<1x512xf32, #tpu.memory_space<vmem>>, vector<1x512xf32>
      %49 = vector.shape_cast %48 : vector<1x512xf32> to vector<1x1x512xf32>
      %cst_19 = arith.constant dense<0.000000e+00> : vector<1xf32>
      %50 = vector.multi_reduction <add>, %49, %cst_19 [1, 2] : vector<1x1x512xf32> to vector<1xf32>
      %51 = vector.shape_cast %50 : vector<1xf32> to vector<1x1x1xf32>
      %52 = vector.extract %51[0, 0, 0] : f32 from vector<1x1x1xf32>
      %53 = tpu.iota {dimensions = array<i32: 0>} : vector<8x128xi32>
      %54 = tpu.iota {dimensions = array<i32: 1>} : vector<8x128xi32>
      %c0_i32_20 = arith.constant 0 : i32
      %55 = vector.broadcast %c0_i32_20 : i32 to vector<8x128xi32>
      %56 = arith.cmpi eq, %53, %55 : vector<8x128xi32>
      %c0_i32_21 = arith.constant 0 : i32
      %57 = vector.broadcast %c0_i32_21 : i32 to vector<8x128xi32>
      %58 = arith.cmpi eq, %54, %57 : vector<8x128xi32>
      %59 = arith.andi %56, %58 : vector<8x128xi1>
      %cst_22 = arith.constant 0.000000e+00 : f32
      %60 = vector.broadcast %52 : f32 to vector<8x128xf32>
      %61 = vector.broadcast %cst_22 : f32 to vector<8x128xf32>
      %62 = arith.select %59, %60, %61 : vector<8x128xi1>, vector<8x128xf32>
      %c0_23 = arith.constant 0 : index
      %c0_24 = arith.constant 0 : index
      %63 = vector.load %arg4[%c0_23, %c0_24] : memref<8x128xf32, #tpu.memory_space<vmem>>, vector<8x128xf32>
      tpu.vector_store %arg4[%c0_23, %c0_24], %62 {strides = array<i32>} : memref<8x128xf32, #tpu.memory_space<vmem>>, vector<8x128xf32>,
    } else {
    }
    return
  }
  func.func @transform_0(%arg0: i32, %arg1: i32) -> (i32, i32) {
    %c1_i32 = arith.constant 1 : i32
    %0 = arith.muli %arg0, %c1_i32 : i32
    %1 = arith.addi %0, %arg1 : i32
    %c0_i32 = arith.constant 0 : i32
    %2 = arith.minsi %1, %c0_i32 : i32
    %c0_i32_0 = arith.constant 0 : i32
    %c0_i32_1 = arith.constant 0 : i32
    return %c0_i32_0, %2 : i32, i32
  }
  func.func @transform_1(%arg0: i32, %arg1: i32) -> (i32, i32) {
    %c1_i32 = arith.constant 1 : i32
    %0 = arith.muli %arg0, %c1_i32 : i32
    %1 = arith.addi %0, %arg1 : i32
    %c0_i32 = arith.constant 0 : i32
    %2 = arith.minsi %1, %c0_i32 : i32
    %c0_i32_0 = arith.constant 0 : i32
    %c0_i32_1 = arith.constant 0 : i32
    return %c0_i32_0, %2 : i32, i32
  }
  func.func @transform_2(%arg0: i32, %arg1: i32) -> (i32, i32) {
    %c0_i32 = arith.constant 0 : i32
    %c0_i32_0 = arith.constant 0 : i32
    return %arg0, %c0_i32 : i32, i32
  }
}

</mosaic_0001>

<bundles_post_ra>
// kernel: tpu_custom_call.1
= control target key start
LH: loop header
LB: loop body
LE: loop exit
PB: predicated region body
PF: predicated region fallthrough
CT: control target
= control target key end

     0   :  { %7 = vsyncpa [#allocation4], 0  ;;  %s617_s0 = inlined_call_operand.hbm [shape: f32[4,512], index: 0, kind: input, shape index: {}]   ;;  %s618_s1 = inlined_call_operand.hbm [shape: s32[1,512], index: 1, kind: input, shape index: {}]   ;;  %s619_s2 = inlined_call_operand.hbm [shape: f32[8,128], index: 2, kind: output, shape index: {}]  }
   0x1   :  { %8 = vsyncpa [#allocation7], 0 }
   0x2   :  { %9 = vsyncpa [#allocation5], 0  ;;  %s494_s9 = smov [#allocation3]   ;;  %s495_s11 = smov [#allocation6]  }
   0x3   :  { %s22_s10 = sshll.u32 %s494_s9, 4  ;;  %s38_s12 = sshll.u32 %s495_s11, 4  ;;  %s23_s10 = int_to_ptr.vmem [resolvable:$true] %s22_s10  ;;  %s39_s12 = int_to_ptr.vmem [resolvable:$true] %s38_s12 }
   0x4   :  { %s422_s15 = scalar_lea.hbm %s617_s0, 256 }
   0x5   :  { %p423_p0 = scmp.ne.s32.totalorder %s617_s0, %s422_s15  ;;  %p426_p1 = scmp.lt.u32.totalorder %s422_s15, %s617_s0 }
   0x7   :  { %p428_p2 = pnand %p426_p1, %p423_p0 }
   0x9   :  { %431 = shalt.err (!%p428_p2)
}
   0xa   :  { %s432_s20 = scalar_lea.vmem %s23_s10, 256  ;;  %p437_p4 = scmp.lt.s32.totalorder %s23_s10, %s23_s10 }
   0xb   :  { %p433_p3 = scmp.ne.s32.totalorder %s23_s10, %s432_s20  ;;  %p438_p5 = scmp.lt.s32.totalorder %s432_s20, %s432_s20 }
   0xd   :  { %p439_p6 = por %p438_p5, %p437_p4 }
   0xf   :  { %p440_p7 = pnand %p439_p6, %p433_p3 }
  0x11   :  { %443 = shalt.err (!%p440_p7)
}
  0x12   :  { %25 = dma.hbm_to_vmem [thread:$0]  %s617_s0, 256, %s23_s10, [#allocation4]  }
  0x13   :  { %s444_s25 = scalar_lea.hbm %s618_s1, 64 }
  0x14   :  { %p445_p8 = scmp.ne.s32.totalorder %s618_s1, %s444_s25  ;;  %p448_p9 = scmp.lt.u32.totalorder %s444_s25, %s618_s1 }
  0x16   :  { %p450_p10 = pnand %p448_p9, %p445_p8 }
  0x18   :  { %453 = shalt.err (!%p450_p10)
}
  0x19   :  { %s454_s30 = scalar_lea.vmem %s39_s12, 64  ;;  %p459_p12 = scmp.lt.s32.totalorder %s39_s12, %s39_s12 }
  0x1a   :  { %p455_p11 = scmp.ne.s32.totalorder %s39_s12, %s454_s30  ;;  %p460_p13 = scmp.lt.s32.totalorder %s454_s30, %s454_s30 }
  0x1c   :  { %p461_p0 = por %p460_p13, %p459_p12 }
  0x1e   :  { %p462_p1 = pnand %p461_p0, %p455_p11 }
  0x20   :  { %465 = shalt.err (!%p462_p1)
}
  0x21   :  { %41 = dma.hbm_to_vmem [thread:$0]  %s618_s1, 64, %s39_s12, [#allocation7]  }
  0x22   :  { %488 = dma.done.wait [#allocation4], 256  }
  0x23   :  { %489 = vsyncadd [#allocation4], 4294967040 }
  0x24   :  { %490 = dma.done.wait [#allocation7], 64  }
  0x25   :  { %491 = vsyncadd [#allocation7], 4294967232  ;;  %v60_v0 = vlaneseq  ;;  %v496_v2 = vmov 0.0   ;;  %vm104_vm1 = vcmask 1043456   ;;  %v65_v3 = vld [vmem:[#allocation3] sm:$0xff]  ;;  %v66_v4 = vld [vmem:[#allocation3 + $0x8] sm:$0xff] }
  0x26   :  { %v100_v6 = vcombine.high %v65_v3, %v65_v3  ;;  %v101_v7 = vcombine.high %v66_v4, %v66_v4  ;;  %v105_v8 = vsel %vm104_vm1, %v65_v3, -inf  ;;  %v119_v9 = vsel %vm104_vm1, %v66_v4, -inf  ;;  %v67_v18 = vld [vmem:[#allocation6] sm:$0xf]  ;;  %s498_s1 = smov [#allocation8]  }
  0x27   :  { %vm539_vm0 = vcmp.lt.s32.totalorder %v60_v0, 512  ;;  %v546_v5 = vshrl.u32 %v60_v0, 7  ;;  %v106_v10 = vrot.slane %v105_v8, 4  ;;  %v120_v12 = vrot.slane %v119_v9, 4  ;;  %s375_s4 = sshll.u32 %s498_s1, 4  ;;  %s376_s4 = int_to_ptr.vmem [resolvable:$true] %s375_s4 }
  0x28   :  { %64 = vst.msk [vmem:[#allocation2] sm:$0xf] %vm539_vm0, %v496_v2  ;;  %v112_v11 = vsel %vm104_vm1, %v100_v6, -inf  ;;  %v126_v13 = vsel %vm104_vm1, %v101_v7, -inf  ;;  %vm346_vm6 = vcmask 1040384   ;;  %s466_s6 = scalar_lea.vmem %s376_s4, 128  ;;  %p471_p3 = scmp.lt.s32.totalorder %s376_s4, %s376_s4 }
  0x29   :  { %v72_v14 = vsub.s32 0, %v546_v5  ;;  %v76_v15 = vsub.s32 1, %v546_v5  ;;  %v113_v16 = vrot.slane %v112_v11, 4  ;;  %v127_v17 = vrot.slane %v126_v13, 4  ;;  %p467_p2 = scmp.ne.s32.totalorder %s376_s4, %s466_s6  ;;  %p472_p4 = scmp.lt.s32.totalorder %s466_s6, %s466_s6 }
  0x2a   :  { %v80_v19 = vsub.s32 2, %v546_v5  ;;  %v84_v20 = vsub.s32 3, %v546_v5  ;;  %v107_v21 = vmax.f32 %v105_v8, %v106_v10  ;;  %v121_v22 = vmax.f32 %v119_v9, %v120_v12 }
  0x2b   :  { %v114_v23 = vmax.f32 %v112_v11, %v113_v16  ;;  %v128_v24 = vmax.f32 %v126_v13, %v127_v17  ;;  %v73_v27 = vrot.slane %v67_v18, %v72_v14  ;;  %v77_v28 = vrot.slane %v67_v18, %v76_v15  ;;  %p473_p5 = por %p472_p4, %p471_p3 }
  0x2c   :  { %v108_v25 = vrot.slane %v107_v21, 2  ;;  %v122_v26 = vrot.slane %v121_v22, 2  ;;  %v81_v31 = vrot.slane %v67_v18, %v80_v19  ;;  %v85_v32 = vrot.slane %v67_v18, %v84_v20 }
  0x2d   :  { %v115_v29 = vrot.slane %v114_v23, 2  ;;  %v129_v30 = vrot.slane %v128_v24, 2  ;;  %vm86_vm2 = vcmp.eq.s32.totalorder %v546_v5, %v73_v27  ;;  %vm87_vm3 = vcmp.eq.s32.totalorder %v546_v5, %v77_v28  ;;  %p474_p6 = pnand %p473_p5, %p467_p2 }
  0x2e   :  { %v109_v33 = vmax.f32 %v107_v21, %v108_v25  ;;  %v123_v34 = vmax.f32 %v121_v22, %v122_v26  ;;  %vm88_vm4 = vcmp.eq.s32.totalorder %v546_v5, %v81_v31  ;;  %vm89_vm5 = vcmp.eq.s32.totalorder %v546_v5, %v85_v32 }
  0x2f   :  { %v116_v35 = vmax.f32 %v114_v23, %v115_v29  ;;  %v130_v36 = vmax.f32 %v128_v24, %v129_v30  ;;  %v389_v45 = vsel %vm86_vm2, 1.0, %v496_v2  ;;  %v390_v46 = vsel %vm87_vm3, 1.0, %v496_v2 }
  0x30   :  { %v110_v37 = vrot.slane %v109_v33, 1  ;;  %v124_v38 = vrot.slane %v123_v34, 1  ;;  %v391_v47 = vsel %vm88_vm4, 1.0, %v496_v2  ;;  %v392_v48 = vsel %vm89_vm5, 1.0, %v496_v2 }
  0x31   :  { %v117_v39 = vrot.slane %v116_v35, 1  ;;  %v131_v40 = vrot.slane %v130_v36, 1  ;;  %v185_v53 = vcombine.low %v389_v45, %v390_v46  ;;  %v186_v54 = vcombine.low %v391_v47, %v392_v48 }
  0x32   :  { %v568_v41 = vmax.f32 %v109_v33, %v110_v37  ;;  %v570_v42 = vmax.f32 %v123_v34, %v124_v38  ;;  %vm363_vm7 = vcmp.eq.s32.totalorder %v546_v5, 0 }
  0x33   :  { %v572_v43 = vmax.f32 %v116_v35, %v117_v39  ;;  %v574_v44 = vmax.f32 %v130_v36, %v131_v40  ;;  %v189_v57 = vmul.f32 %v185_v53, %v65_v3  ;;  %v190_v58 = vmul.f32 %v186_v54, %v66_v4 }
  0x35   :  { %v137_v49 = vcombine.low %v568_v41, %v572_v43  ;;  %v138_v50 = vcombine.low %v570_v42, %v574_v44  ;;  %v193_v59 = vcombine.high %v189_v57, %v189_v57  ;;  %v194_v60 = vcombine.high %v190_v58, %v190_v58 }
  0x36   :  { %v197_v61 = vsel %vm104_vm1, %v189_v57, 0.0  ;;  %v211_v62 = vsel %vm104_vm1, %v190_v58, 0.0 }
  0x37   :  { %v141_v51 = vsub.f32 %v65_v3, %v137_v49  ;;  %v142_v52 = vsub.f32 %v66_v4, %v138_v50  ;;  %v204_v63 = vsel %vm104_vm1, %v193_v59, 0.0  ;;  %v198_v2 = vrot.slane %v197_v61, 4 }
  0x38   :  { %v218_v6 = vsel %vm104_vm1, %v194_v60, 0.0  ;;  %v212_v8 = vrot.slane %v211_v62, 4  ;;  %v205_v3 = vrot.slane %v204_v63, 4 }
  0x39   :  { %v143_v55 = vmul.f32 1.442695, %v141_v51  ;;  %v145_v56 = vmul.f32 1.442695, %v142_v52  ;;  %v219_v16 = vrot.slane %v218_v6, 4  ;;  %v199_v21 = vadd.f32 %v198_v2, %v197_v61 }
  0x3a   :  { %v213_v25 = vadd.f32 %v212_v8, %v211_v62  ;;  %v206_v28 = vadd.f32 %v205_v3, %v204_v63 }
  0x3b   :  { %402 = vpow2.f32 %v143_v55  ;;  %v220_v31 = vadd.f32 %v219_v16, %v218_v6  ;;  %v200_v34 = vrot.slane %v199_v21, 2 }
  0x3c   :  { %404 = vpow2.f32 %v145_v56  ;;  %v214_v37 = vrot.slane %v213_v25, 2  ;;  %v207_v40 = vrot.slane %v206_v28, 2 }
  0x3d   :  { %v221_v47 = vrot.slane %v220_v31, 2  ;;  %v201_v50 = vadd.f32 %v200_v34, %v199_v21 }
  0x3e   :  { %v215_v53 = vadd.f32 %v214_v37, %v213_v25  ;;  %v208_v56 = vadd.f32 %v207_v40, %v206_v28 }
  0x3f   :  { %v222_v58 = vadd.f32 %v221_v47, %v220_v31  ;;  %v202_v60 = vrot.slane %v201_v50, 1 }
  0x40   :  { %v216_v61 = vrot.slane %v215_v53, 1  ;;  %v209_v62 = vrot.slane %v208_v56, 1 }
  0x41   :  { %v223_v63 = vrot.slane %v222_v58, 1  ;;  %v203_v2 = vadd.f32 %v202_v60, %v201_v50  ;;  %v285_v60 = vld [vmem:[#allocation2] sm:$0xf] }
  0x42   :  { %v217_v6 = vadd.f32 %v216_v61, %v215_v53 }
  0x43   :  { %v224_v8 = vadd.f32 %v223_v63, %v222_v58 }
  0x45   :  { %v403_v7 = vpop.eup %402  ;;  %v228_v16 = vsub.f32 %v224_v8, %v574_v44  ;;  %v497_v44 = vmov 1966171168  }
  0x46   :  { %v405_v9 = vpop.eup %404  ;;  %v149_v10 = vcombine.high %v403_v7, %v403_v7  ;;  %v153_v11 = vsel %vm104_vm1, %v403_v7, 0.0  ;;  %v210_v7 = vadd.f32 %v209_v62, %v208_v56  ;;  %v293_v31 = vunpack.c.l.s4 %v497_v44 }
  0x47   :  { %v150_v12 = vcombine.high %v405_v9, %v405_v9  ;;  %v154_v4 = vrot.slane %v153_v11, 4  ;;  %v167_v13 = vsel %vm104_vm1, %v405_v9, 0.0  ;;  %v225_v9 = vsub.f32 %v203_v2, %v568_v41 }
  0x48   :  { %v160_v17 = vsel %vm104_vm1, %v149_v10, 0.0  ;;  %v168_v18 = vrot.slane %v167_v13, 4 }
  0x49   :  { %v155_v22 = vadd.f32 %v154_v4, %v153_v11  ;;  %v161_v23 = vrot.slane %v160_v17, 4  ;;  %v174_v24 = vsel %vm104_vm1, %v150_v12, 0.0  ;;  %v227_v11 = vsub.f32 %v217_v6, %v570_v42 }
  0x4a   :  { %v169_v26 = vadd.f32 %v168_v18, %v167_v13  ;;  %v175_v27 = vrot.slane %v174_v24, 4  ;;  %v226_v12 = vsub.f32 %v210_v7, %v572_v43 }
  0x4b   :  { %v156_v29 = vrot.slane %v155_v22, 2  ;;  %v162_v30 = vadd.f32 %v161_v23, %v160_v17 }
  0x4c   :  { %v170_v32 = vrot.slane %v169_v26, 2  ;;  %v176_v33 = vadd.f32 %v175_v27, %v174_v24 }
  0x4d   :  { %v157_v35 = vadd.f32 %v156_v29, %v155_v22  ;;  %v163_v36 = vrot.slane %v162_v30, 2 }
  0x4e   :  { %v171_v38 = vadd.f32 %v170_v32, %v169_v26  ;;  %v177_v39 = vrot.slane %v176_v33, 2 }
  0x4f   :  { %v158_v45 = vrot.slane %v157_v35, 1  ;;  %v164_v46 = vadd.f32 %v163_v36, %v162_v30 }
  0x50   :  { %v172_v48 = vrot.slane %v171_v38, 1  ;;  %v178_v49 = vadd.f32 %v177_v39, %v176_v33 }
  0x51   :  { %v159_v51 = vadd.f32 %v158_v45, %v157_v35  ;;  %v165_v52 = vrot.slane %v164_v46, 1  ;;  %v294_v45 = vunpack.c.0.s8 %v293_v31 }
  0x52   :  { %v173_v54 = vadd.f32 %v172_v48, %v171_v38  ;;  %v179_v55 = vrot.slane %v178_v49, 1 }
  0x53   :  { %v166_v57 = vadd.f32 %v165_v52, %v164_v46  ;;  %406 = vlog2.f32 %v159_v51  ;;  %v297_v53 = vsub.s32 %v294_v45, %v546_v5 }
  0x54   :  { %v180_v59 = vadd.f32 %v179_v55, %v178_v49  ;;  %408 = vlog2.f32 %v173_v54 }
  0x55   :  { %410 = vlog2.f32 %v166_v57 }
  0x56   :  { %412 = vlog2.f32 %v180_v59 }
  0x5d   :  { %v407_v10 = vpop.eup %406 }
  0x5e   :  { %v409_v3 = vpop.eup %408  ;;  %v230_v4 = vmul.f32 0.6931472, %v407_v10 }
  0x5f   :  { %v411_v13 = vpop.eup %410  ;;  %v234_v17 = vmul.f32 0.6931472, %v409_v3 }
  0x60   :  { %v413_v18 = vpop.eup %412  ;;  %v232_v21 = vmul.f32 0.6931472, %v411_v13  ;;  %v237_v22 = vsub.f32 %v225_v9, %v230_v4 }
  0x61   :  { %v236_v23 = vmul.f32 0.6931472, %v413_v18  ;;  %v239_v24 = vsub.f32 %v227_v11, %v234_v17 }
  0x62   :  { %v238_v25 = vsub.f32 %v226_v12, %v232_v21  ;;  %v241_v26 = vmul.f32 1.442695, %v237_v22 }
  0x63   :  { %v240_v27 = vsub.f32 %v228_v16, %v236_v23  ;;  %v245_v41 = vmul.f32 1.442695, %v239_v24 }
  0x64   :  { %414 = vpow2.f32 %v241_v26  ;;  %v243_v28 = vmul.f32 1.442695, %v238_v25 }
  0x65   :  { %416 = vpow2.f32 %v245_v41  ;;  %v247_v42 = vmul.f32 1.442695, %v240_v27 }
  0x66   :  { %418 = vpow2.f32 %v243_v28 }
  0x67   :  { %420 = vpow2.f32 %v247_v42 }
  0x6e   :  { %v415_v43 = vpop.eup %414 }
  0x6f   :  { %v417_v29 = vpop.eup %416  ;;  %v249_v30 = vsub.f32 1.0, %v415_v43 }
  0x70   :  { %v419_v32 = vpop.eup %418  ;;  %v251_v33 = vsub.f32 1.0, %v417_v29 }
  0x71   :  { %v421_v34 = vpop.eup %420  ;;  %v250_v35 = vsub.f32 1.0, %v419_v32  ;;  %v253_v36 = vmul.f32 %v249_v30, %v249_v30 }
  0x72   :  { %v252_v37 = vsub.f32 1.0, %v421_v34  ;;  %v255_v38 = vmul.f32 %v251_v33, %v251_v33 }
  0x73   :  { %v254_v39 = vmul.f32 %v250_v35, %v250_v35  ;;  %v257_v40 = vsub.f32 0.0, %v253_v36 }
  0x74   :  { %v256_v46 = vmul.f32 %v252_v37, %v252_v37  ;;  %v259_v47 = vsub.f32 0.0, %v255_v38 }
  0x75   :  { %v258_v48 = vsub.f32 0.0, %v254_v39  ;;  %v261_v49 = vmul.f32 %v257_v40, %v237_v22 }
  0x76   :  { %v260_v50 = vsub.f32 0.0, %v256_v46  ;;  %v263_v51 = vmul.f32 %v259_v47, %v239_v24 }
  0x77   :  { %v262_v52 = vmul.f32 %v258_v48, %v238_v25 }
  0x78   :  { %v264_v54 = vmul.f32 %v260_v50, %v240_v27 }
  0x79   :  { %v290_v55 = vcombine.low %v261_v49, %v262_v52 }
  0x7a   :  { %v291_v56 = vcombine.low %v263_v51, %v264_v54 }
  0x7b   :  { %v298_v57 = vrot.slane %v290_v55, %v297_v53 }
  0x7c   :  { %v305_v58 = vrot.slane %v291_v56, %v297_v53 }
  0x7e   :  { %v306_v59 = vcombine.low %v298_v57, %v305_v58 }
  0x80   :  { %v313_v61 = vrot.slane %v306_v59, %v297_v53 }
  0x82   :  { %v315_v62 = vadd.f32 %v313_v61, %v285_v60 }
  0x84   :  { %320 = vst.msk [vmem:[#allocation2] sm:$0xf] %vm539_vm0, %v315_v62 }
  0x8b   :  { %v324_v63 = vld [vmem:[#allocation2] sm:$0xf] }
  0x8c   :  { %v329_v2 = vrot.slane %v324_v63, %v72_v14  ;;  %v333_v6 = vrot.slane %v324_v63, %v76_v15  ;;  %v337_v7 = vrot.slane %v324_v63, %v80_v19  ;;  %v341_v8 = vrot.slane %v324_v63, %v84_v20 }
  0x8d   :  { %v268_v19 = vand.u32 127, %v60_v0 }
  0x8e   :  { %v347_v9 = vsel %vm346_vm6, %v329_v2, 0.0  ;;  %v348_v10 = vsel %vm346_vm6, %v333_v6, 0.0  ;;  %v350_v11 = vsel %vm346_vm6, %v337_v7, 0.0  ;;  %v352_v1 = vsel %vm346_vm6, %v341_v8, 0.0 }
  0x8f   :  { %v349_v3 = vadd.f32 %v348_v10, %v347_v9  ;;  %vm364_vm8 = vcmp.eq.s32.totalorder %v268_v19, 0 }
  0x90   :  { %vm365_vm9 = vmand %vm363_vm7, %vm364_vm8 }
  0x91   :  { %v351_v12 = vadd.f32 %v350_v11, %v349_v3 }
  0x93   :  { %v353_v4 = vadd.f32 %v352_v1, %v351_v12 }
  0x95   :  { %354 = vadd.xlane.f32.xlu0 %v353_v4 }
 0x122   :  { %v355_v13 = vpop.xlane.xlu0 %354 }
 0x123   :  { %v356_v16 = vrot.slane %v355_v13, 4 }
 0x125   :  { %v357_v14 = vadd.f32 %v356_v16, %v355_v13 }
 0x127   :  { %v358_v17 = vrot.slane %v357_v14, 2 }
 0x129   :  { %v359_v18 = vadd.f32 %v358_v17, %v357_v14 }
 0x12b   :  { %v360_v15 = vrot.slane %v359_v18, 1 }
 0x12d   :  { %v361_v21 = vadd.f32 %v360_v15, %v359_v18 }
 0x12f   :  { %393 = vpush %v361_v21 }
 0x160   :  { %s394_s5 = spop %393 }
 0x161   :  { %v366_v20 = vstv %s394_s5 }
 0x162   :  { %v367_v22 = vsel %vm365_vm9, %v366_v20, 0.0 }
 0x163   :  { %368 = vst [vmem:[#allocation8] sm:$0xff] %v367_v22 }
 0x164   :  { %477 = shalt.err (!%p474_p6)
}
 0x165   :  { %s478_s9 = scalar_lea.hbm %s619_s2, 128 }
 0x166   :  { %p479_p7 = scmp.ne.s32.totalorder %s619_s2, %s478_s9  ;;  %p482_p8 = scmp.lt.u32.totalorder %s478_s9, %s619_s2 }
 0x168   :  { %p484_p9 = pnand %p482_p8, %p479_p7 }
 0x16a   :  { %487 = shalt.err (!%p484_p9)
}
 0x16b   :  { %378 = dma.vmem_to_hbm [thread:$0]  %s376_s4, 128, %s619_s2, [#allocation5]  }
 0x16c   :  { %492 = dma.done.wait [#allocation5], 128  }
 0x16d   :  { %493 = vsyncadd [#allocation5], 4294967168 }
 0x16e   :  { %382 = vsyncpa [#allocation4], 1 }
 0x16f   :  { %383 = vsyncpa [#allocation7], 1 }
 0x170   :  { %384 = vsyncpa [#allocation5], 1 }

</bundles_post_ra>
